<compile_context>
chip_gen: v7x
topology: tpu7x:2x2x1
jax: 0.10.0
libtpu: 0.0.40
codegen_flags: <defaults>
</compile_context>

<pallas_src>
import functools

import jax
import jax.numpy as jnp
from jax.experimental import pallas as pl
from jax.experimental.pallas import tpu as pltpu

MAX_TILE_B = 1024                 # largest batch tile (amortizes ~0.35 us per-step grid overhead)
VMEM_BUDGET = 40 * 1024 * 1024    # conservative working-set budget (fits v7x's 64 MiB VMEM)


def _round_up(x, m):
    return (x + m - 1) // m * m


# ---------------------------------------------------------------------------
# Fused kernel
# ---------------------------------------------------------------------------

def _fused_mlp_kernel(*refs, num_hidden):
    """Fused forward pass for the whole MLP.

    ref layout (matching call-arg order):
      refs[0]                      : x_ref      VMEM (tile_b, In)      f32 or bf16
      refs[1 + 3*i + 0]            : w_i        VMEM (d_in_i, d_out_i) f32 or bf16
      refs[1 + 3*i + 1]            : b_i        VMEM (1, d_out_i)      f32
      refs[1 + 3*i + 2]            : alpha_i    SMEM (1,)              f32 PReLU slope
      refs[-3]                     : w_out      VMEM (1, d_last)       f32
      refs[-2]                     : b_out      SMEM (1,)              f32
      refs[-1]                     : o_ref      VMEM (tile_b, 1)       f32
    """
    x_ref = refs[0]
    w_out_ref = refs[-3]
    b_out_ref = refs[-2]
    o_ref = refs[-1]
    layer_refs = refs[1:1 + 3 * num_hidden]

    h = x_ref[...]                       # activations live in vregs/VMEM from here on
    for i in range(num_hidden):
        w_ref = layer_refs[3 * i]
        b_ref = layer_refs[3 * i + 1]
        a = layer_refs[3 * i + 2][0]     # hoisted scalar read (num_parameters=1 PReLU)
        # MXU matmul with f32 accumulation; inputs may be bf16-streamed.
        y = jnp.dot(h.astype(w_ref.dtype), w_ref[...],
                    preferred_element_type=jnp.float32) + b_ref[...]
        h = jnp.where(y >= 0.0, y, a * y)  # PReLU in f32 (y==0 -> positive branch, as in PyTorch)

    # Final Linear(d_last, 1): elementwise multiply + lane (XLU) reduction instead of
    # a 1-lane-wide MXU pass; store the (tile_b, 1) result directly (no lane padding).
    y = jnp.sum(h.astype(jnp.float32) * w_out_ref[...], axis=-1, keepdims=True) + b_out_ref[0]
    o_ref[...] = y.astype(o_ref.dtype)


# ---------------------------------------------------------------------------
# Wrapper
# ---------------------------------------------------------------------------

def _fused_forward(x, params):
    ws, bs, alphas = params["w"], params["b"], params["alpha"]
    w_out, b_out = params["w_out"], params["b_out"]
    B, In = x.shape
    num_hidden = len(ws)

    # Stream x in the same dtype as the hidden weights (f32 by default; cast the
    # weights to bf16 to halve the dominant HBM read -- accumulation stays f32).
    stream_dtype = ws[0].dtype if num_hidden else x.dtype
    x = x.astype(stream_dtype)

    # --- batch tiling --------------------------------------------------------
    if B <= 16:
        tile_b = _round_up(B, 8)                 # single small tile (f32 sublane = 8)
    elif B <= 2 * MAX_TILE_B:
        tile_b = _round_up(pl.cdiv(B, 2), 8)     # >= 2 grid steps: v7x megacore sharding
    else:
        tile_b = MAX_TILE_B

    def working_set(tb):                         # default double-buffering on every spec
        resident = sum(int(a.size) * a.dtype.itemsize for a in (*ws, *bs, w_out))
        stream = tb * In * x.dtype.itemsize + tb * 1 * 4
        return 2 * (resident + stream)

    while tile_b > 8 and working_set(tile_b) > VMEM_BUDGET:
        tile_b = max(8, _round_up(tile_b // 2, 8))

    B_pad = _round_up(B, tile_b)
    if B_pad != B:
        x = jnp.pad(x, ((0, B_pad - B), (0, 0)))
    grid = (B_pad // tile_b,)

    # --- specs ---------------------------------------------------------------
    in_specs = [pl.BlockSpec((tile_b, In), lambda i: (i, 0))]
    call_args = [x]
    for w, b, a in zip(ws, bs, alphas):
        d_in, d_out = w.shape
        in_specs += [
            pl.BlockSpec((d_in, d_out), lambda i: (0, 0)),        # weight, resident
            pl.BlockSpec((1, d_out), lambda i: (0, 0)),           # bias, resident
            pl.BlockSpec(memory_space=pltpu.MemorySpace.SMEM),    # PReLU alpha (scalar)
        ]
        call_args += [w, b, a]
    in_specs += [
        pl.BlockSpec((1, w_out.shape[1]), lambda i: (0, 0)),      # final weight [1, d_last]
        pl.BlockSpec(memory_space=pltpu.MemorySpace.SMEM),        # final bias (scalar)
    ]
    call_args += [w_out, b_out]

    # --- compiler params ------------------------------------------------------
    compiler_kwargs = dict(dimension_semantics=("parallel",))
    vmem_needed = working_set(tile_b)
    if vmem_needed > 12 * 1024 * 1024:
        # Default scoped VMEM (16/32 MiB) would be the binding constraint on v5e/v6e;
        # raise it explicitly, staying well under v7x's 64 MiB physical VMEM.
        compiler_kwargs["vmem_limit_bytes"] = int(min(2 * vmem_needed, 48 * 1024 * 1024))

    # --- advisory cost estimate (matches the new traffic: (B,1) f32 output) ----
    flops = sum(2 * B_pad * w.shape[0] * w.shape[1] for w in ws) + 2 * B_pad * w_out.shape[1]
    bytes_accessed = (sum(int(a.size) * a.dtype.itemsize for a in call_args)
                      + B_pad * 1 * 4)

    kernel = functools.partial(_fused_mlp_kernel, num_hidden=num_hidden)

    out = pl.pallas_call(
        kernel,
        out_shape=jax.ShapeDtypeStruct((B_pad, 1), jnp.float32),
        grid=grid,
        in_specs=in_specs,
        out_specs=pl.BlockSpec((tile_b, 1), lambda i: (i, 0)),
        compiler_params=pltpu.CompilerParams(**compiler_kwargs),
        cost_estimate=pl.CostEstimate(
            flops=flops, transcendentals=0, bytes_accessed=bytes_accessed),
    )(*call_args)
    return out[:B]


custom_net_forward = jax.jit(_fused_forward)


# ---------------------------------------------------------------------------
# Parameter construction (pure-array pytree; mimics PyTorch defaults)
# ---------------------------------------------------------------------------

def init_params(key, input_size, hidden_size):
    dims = [input_size] + list(hidden_size)
    ws, bs, alphas = [], [], []
    for i in range(len(dims) - 1):
        fan_in, fan_out = dims[i], dims[i + 1]
        key, kw, kb = jax.random.split(key, 3)
        bound = 1.0 / jnp.sqrt(fan_in)
        ws.append(jax.random.uniform(kw, (fan_in, fan_out), jnp.float32, -bound, bound))
        bs.append(jax.random.uniform(kb, (1, fan_out), jnp.float32, -bound, bound))
        alphas.append(jnp.full((1,), 0.25, dtype=jnp.float32))  # PReLU default init
    fan_in = dims[-1]
    key, kw, kb = jax.random.split(key, 3)
    bound = 1.0 / jnp.sqrt(fan_in)
    w_out = jax.random.uniform(kw, (1, fan_in), jnp.float32, -bound, bound)  # [1, in]
    b_out = jax.random.uniform(kb, (1,), jnp.float32, -bound, bound)
    return {"w": ws, "b": bs, "alpha": alphas, "w_out": w_out, "b_out": b_out}


def cast_params_for_bf16_streaming(params):
    """Cast the big streamed tensors (hidden weights) to bf16; keep f32 accumulation path."""
    p = dict(params)
    p["w"] = [w.astype(jnp.bfloat16) for w in params["w"]]
    return p


def reference_forward(x, params):
    h = x
    for w, b, a in zip(params["w"], params["b"], params["alpha"]):
        y = h @ w.astype(jnp.float32) + b
        h = jnp.where(y >= 0.0, y, a[0] * y)
    return jnp.sum(h * params["w_out"], axis=-1, keepdims=True) + params["b_out"][0]


if __name__ == "__main__":
    key = jax.random.PRNGKey(0)
    k_params, k_x = jax.random.split(key)

    input_size = 32
    hidden_size = [64, 32]
    batch = 8

    params = init_params(k_params, input_size, hidden_size)
    x = jax.random.normal(k_x, (batch, input_size), dtype=jnp.float32)

    ref = reference_forward(x, params)

    # f32 path: bit-for-bit semantics of the PyTorch module.
    out = jax.block_until_ready(custom_net_forward(x, params))
    assert out.shape == (batch, 1), out.shape
    assert jnp.allclose(out, ref, atol=1e-5, rtol=1e-5), (out, ref)

    # bf16-streaming path (halves dominant HBM read; f32 accumulation / PReLU).
    params_bf16 = cast_params_for_bf16_streaming(params)
    out_bf16 = jax.block_until_ready(custom_net_forward(x, params_bf16))
    assert out_bf16.shape == (batch, 1), out_bf16.shape
    assert jnp.allclose(out_bf16, ref, atol=5e-2, rtol=5e-2), (out_bf16, ref)

    print("KERNEL_OK")
</pallas_src>

<mosaic_0001>
module attributes {stable_mosaic.version = 11 : i64} {
  func.func @_fused_mlp_kernel(%arg0: i32, %arg1: memref<8x32xf32, #tpu.memory_space<vmem>>, %arg2: memref<32x64xf32, #tpu.memory_space<vmem>>, %arg3: memref<1x64xf32, #tpu.memory_space<vmem>>, %arg4: memref<1xf32, #tpu.memory_space<smem>>, %arg5: memref<64x32xf32, #tpu.memory_space<vmem>>, %arg6: memref<1x32xf32, #tpu.memory_space<vmem>>, %arg7: memref<1xf32, #tpu.memory_space<smem>>, %arg8: memref<1x32xf32, #tpu.memory_space<vmem>>, %arg9: memref<1xf32, #tpu.memory_space<smem>>, %arg10: memref<8x1xf32, #tpu.memory_space<vmem>>) attributes {dimension_semantics = [#tpu.dimension_semantics<parallel>], iteration_bounds = array<i64: 1>, scalar_prefetch = 0 : i64, scratch_operands = 0 : i64, tpu.core_type = #tpu.core_type<tc>, window_params = [{transform_indices = @transform_0, window_bounds = array<i64: 8, 32>}, {pipeline_mode = #tpu.pipeline_mode<synchronous>, transform_indices = @transform_1, window_bounds = array<i64: 32, 64>}, {pipeline_mode = #tpu.pipeline_mode<synchronous>, transform_indices = @transform_2, window_bounds = array<i64: 1, 64>}, {transform_indices = @transform_3, window_bounds = array<i64: 1>}, {pipeline_mode = #tpu.pipeline_mode<synchronous>, transform_indices = @transform_4, window_bounds = array<i64: 64, 32>}, {pipeline_mode = #tpu.pipeline_mode<synchronous>, transform_indices = @transform_5, window_bounds = array<i64: 1, 32>}, {transform_indices = @transform_6, window_bounds = array<i64: 1>}, {pipeline_mode = #tpu.pipeline_mode<synchronous>, transform_indices = @transform_7, window_bounds = array<i64: 1, 32>}, {transform_indices = @transform_8, window_bounds = array<i64: 1>}, {transform_indices = @transform_9, window_bounds = array<i64: 8, 1>}]} {
    %c0 = arith.constant 0 : index
    %c0_0 = arith.constant 0 : index
    %0 = vector.load %arg1[%c0, %c0_0] : memref<8x32xf32, #tpu.memory_space<vmem>>, vector<8x32xf32>
    %c0_1 = arith.constant 0 : index
    %1 = memref.load %arg4[%c0_1] : memref<1xf32, #tpu.memory_space<smem>>
    %c0_2 = arith.constant 0 : index
    %c0_3 = arith.constant 0 : index
    %2 = vector.load %arg2[%c0_2, %c0_3] : memref<32x64xf32, #tpu.memory_space<vmem>>, vector<32x64xf32>
    %cst = arith.constant dense<0.000000e+00> : vector<8x64xf32>
    %3 = tpu.matmul %0, %2, %cst {dimension_numbers = #tpu.dot_dimension_numbers<[1], [0], [0], [1], [0, 0, 1, 1], [], []>} : vector<8x32xf32>, vector<32x64xf32>, vector<8x64xf32> -> vector<8x64xf32>
    %c0_4 = arith.constant 0 : index
    %c0_5 = arith.constant 0 : index
    %4 = vector.load %arg3[%c0_4, %c0_5] : memref<1x64xf32, #tpu.memory_space<vmem>>, vector<1x64xf32>
    %5 = vector.broadcast %4 : vector<1x64xf32> to vector<8x64xf32>
    %6 = arith.addf %3, %5 : vector<8x64xf32>
    %cst_6 = arith.constant 0.000000e+00 : f32
    %7 = vector.broadcast %cst_6 : f32 to vector<8x64xf32>
    %8 = arith.cmpf oge, %6, %7 : vector<8x64xf32>
    %9 = vector.broadcast %1 : f32 to vector<8x64xf32>
    %10 = arith.mulf %9, %6 : vector<8x64xf32>
    %11 = arith.select %8, %6, %10 : vector<8x64xi1>, vector<8x64xf32>
    %c0_7 = arith.constant 0 : index
    %12 = memref.load %arg7[%c0_7] : memref<1xf32, #tpu.memory_space<smem>>
    %c0_8 = arith.constant 0 : index
    %c0_9 = arith.constant 0 : index
    %13 = vector.load %arg5[%c0_8, %c0_9] : memref<64x32xf32, #tpu.memory_space<vmem>>, vector<64x32xf32>
    %cst_10 = arith.constant dense<0.000000e+00> : vector<8x32xf32>
    %14 = tpu.matmul %11, %13, %cst_10 {dimension_numbers = #tpu.dot_dimension_numbers<[1], [0], [0], [1], [0, 0, 1, 1], [], []>} : vector<8x64xf32>, vector<64x32xf32>, vector<8x32xf32> -> vector<8x32xf32>
    %c0_11 = arith.constant 0 : index
    %c0_12 = arith.constant 0 : index
    %15 = vector.load %arg6[%c0_11, %c0_12] : memref<1x32xf32, #tpu.memory_space<vmem>>, vector<1x32xf32>
    %16 = vector.broadcast %15 : vector<1x32xf32> to vector<8x32xf32>
    %17 = arith.addf %14, %16 : vector<8x32xf32>
    %cst_13 = arith.constant 0.000000e+00 : f32
    %18 = vector.broadcast %cst_13 : f32 to vector<8x32xf32>
    %19 = arith.cmpf oge, %17, %18 : vector<8x32xf32>
    %20 = vector.broadcast %12 : f32 to vector<8x32xf32>
    %21 = arith.mulf %20, %17 : vector<8x32xf32>
    %22 = arith.select %19, %17, %21 : vector<8x32xi1>, vector<8x32xf32>
    %c0_14 = arith.constant 0 : index
    %c0_15 = arith.constant 0 : index
    %23 = vector.load %arg8[%c0_14, %c0_15] : memref<1x32xf32, #tpu.memory_space<vmem>>, vector<1x32xf32>
    %24 = vector.broadcast %23 : vector<1x32xf32> to vector<8x32xf32>
    %25 = arith.mulf %22, %24 : vector<8x32xf32>
    %cst_16 = arith.constant dense<0.000000e+00> : vector<8xf32>
    %26 = vector.multi_reduction <add>, %25, %cst_16 [1] : vector<8x32xf32> to vector<8xf32>
    %27 = vector.shape_cast %26 : vector<8xf32> to vector<8x1xf32>
    %c0_17 = arith.constant 0 : index
    %28 = memref.load %arg9[%c0_17] : memref<1xf32, #tpu.memory_space<smem>>
    %29 = vector.broadcast %28 : f32 to vector<8x1xf32>
    %30 = arith.addf %27, %29 : vector<8x1xf32>
    %c0_18 = arith.constant 0 : index
    %c0_19 = arith.constant 0 : index
    %31 = vector.load %arg10[%c0_18, %c0_19] : memref<8x1xf32, #tpu.memory_space<vmem>>, vector<8x1xf32>
    tpu.vector_store %arg10[%c0_18, %c0_19], %30 {strides = array<i32>} : memref<8x1xf32, #tpu.memory_space<vmem>>, vector<8x1xf32>,
    return
  }
  func.func @transform_0(%arg0: i32) -> (i32, i32) {
    %c0_i32 = arith.constant 0 : i32
    %c0_i32_0 = arith.constant 0 : i32
    return %arg0, %c0_i32 : i32, i32
  }
  func.func @transform_1(%arg0: i32) -> (i32, i32) {
    %c0_i32 = arith.constant 0 : i32
    %c0_i32_0 = arith.constant 0 : i32
    %c0_i32_1 = arith.constant 0 : i32
    return %c0_i32, %c0_i32_0 : i32, i32
  }
  func.func @transform_2(%arg0: i32) -> (i32, i32) {
    %c0_i32 = arith.constant 0 : i32
    %c0_i32_0 = arith.constant 0 : i32
    %c0_i32_1 = arith.constant 0 : i32
    return %c0_i32, %c0_i32_0 : i32, i32
  }
  func.func @transform_3(%arg0: i32) -> i32 {
    %c0_i32 = arith.constant 0 : i32
    %c0_i32_0 = arith.constant 0 : i32
    return %c0_i32 : i32
  }
  func.func @transform_4(%arg0: i32) -> (i32, i32) {
    %c0_i32 = arith.constant 0 : i32
    %c0_i32_0 = arith.constant 0 : i32
    %c0_i32_1 = arith.constant 0 : i32
    return %c0_i32, %c0_i32_0 : i32, i32
  }
  func.func @transform_5(%arg0: i32) -> (i32, i32) {
    %c0_i32 = arith.constant 0 : i32
    %c0_i32_0 = arith.constant 0 : i32
    %c0_i32_1 = arith.constant 0 : i32
    return %c0_i32, %c0_i32_0 : i32, i32
  }
  func.func @transform_6(%arg0: i32) -> i32 {
    %c0_i32 = arith.constant 0 : i32
    %c0_i32_0 = arith.constant 0 : i32
    return %c0_i32 : i32
  }
  func.func @transform_7(%arg0: i32) -> (i32, i32) {
    %c0_i32 = arith.constant 0 : i32
    %c0_i32_0 = arith.constant 0 : i32
    %c0_i32_1 = arith.constant 0 : i32
    return %c0_i32, %c0_i32_0 : i32, i32
  }
  func.func @transform_8(%arg0: i32) -> i32 {
    %c0_i32 = arith.constant 0 : i32
    %c0_i32_0 = arith.constant 0 : i32
    return %c0_i32 : i32
  }
  func.func @transform_9(%arg0: i32) -> (i32, i32) {
    %c0_i32 = arith.constant 0 : i32
    %c0_i32_0 = arith.constant 0 : i32
    return %arg0, %c0_i32 : i32, i32
  }
}

</mosaic_0001>

<bundles_post_ra>
// kernel: _fused_forward.1
= control target key start
LH: loop header
LB: loop body
LE: loop exit
PB: predicated region body
PF: predicated region fallthrough
CT: control target
= control target key end

     0   :  { %v310_v0 = vmov 0.0|0.0   ;;  %vm311_vm0 = vmmov 0   ;;  %v312_v4 = vmov 0.0   ;;  %vm48_vm1 = vcmask 261120   ;;  %s425_s1 = inlined_call_operand.vmem [shape: f32[32,64], index: 1, kind: input, shape index: {}]   ;;  %s426_s4 = inlined_call_operand.vmem [shape: f32[64,32], index: 4, kind: input, shape index: {}]   ;;  %s427_s0 = inlined_call_operand.vmem [shape: f32[8,32], index: 0, kind: input, shape index: {}]   ;;  %s428_s2 = inlined_call_operand.vmem [shape: f32[1,64], index: 2, kind: input, shape index: {}]   ;;  %s429_s3 = inlined_call_operand.<no memory space> [shape: f32[1], index: 3, kind: input, shape index: {}]   ;;  %s430_s5 = inlined_call_operand.vmem [shape: f32[1,32], index: 5, kind: input, shape index: {}]   ;;  %s431_s6 = inlined_call_operand.<no memory space> [shape: f32[1], index: 6, kind: input, shape index: {}]   ;;  %s432_s7 = inlined_call_operand.vmem [shape: f32[1,32], index: 7, kind: input, shape index: {}]   ;;  %s433_s8 = inlined_call_operand.<no memory space> [shape: f32[1], index: 8, kind: input, shape index: {}]   ;;  %s434_s9 = inlined_call_operand.vmem [shape: f32[8,1], index: 9, kind: output, shape index: {}]  }
   0x1   :  { %289 = vmatprep.subr.bf16.mxu0 %v310_v0  ;;  %v37_v1 = vld [vmem:[%s425_s1] sm:$0xff]  ;;  %v38_v2 = vld [vmem:[%s425_s1 + $0x8] sm:$0xff]  ;;  %v39_v3 = vld [vmem:[%s425_s1 + $0x10] sm:$0xff]  ;;  %267 = vmatprep.mubr.msk.f32.mxu0 %vm311_vm0, %v312_v4  ;;  %v123_v23 = vstv %s429_s3  ;;  %vm142_vm3 = vcmask 523264   ;;  %vm234_vm5 = vcmask 7168  }
   0x2   :  { %v290_v5 = vpack.c.bf16 %v38_v2, %v37_v1  ;;  %v40_v6 = vld [vmem:[%s425_s1 + $0x18] sm:$0xff]  ;;  %295 = vmatprep.subr.bf16.mxu1 %v310_v0  ;;  %v127_v7 = vld [vmem:[%s426_s4] sm:$0xff]  ;;  %286 = vmatprep.mubr.msk.f32.mxu1 %vm311_vm0, %v312_v4  ;;  %v128_v8 = vld [vmem:[%s426_s4 + $0x8] sm:$0xff]  ;;  %v217_v30 = vstv %s431_s6 }
   0x3   :  { %v129_v9 = vld [vmem:[%s426_s4 + $0x10] sm:$0xff]  ;;  %v130_v10 = vld [vmem:[%s426_s4 + $0x18] sm:$0xff]  ;;  %v293_v11 = vpack.c.bf16 %v40_v6, %v39_v3  ;;  %v296_v12 = vpack.c.bf16 %v128_v8, %v127_v7  ;;  %v131_v14 = vld [vmem:[%s426_s4 + $0x20] sm:$0xff]  ;;  %v232_v38 = vstv %s433_s8 }
   0x4   :  { %291 = vmatpush3.bf16.msra.mxu0 %v290_v5  ;;  %v299_v13 = vpack.c.bf16 %v130_v10, %v129_v9  ;;  %v132_v15 = vld [vmem:[%s426_s4 + $0x28] sm:$0xff]  ;;  %v35_v16 = vld [vmem:[%s427_s0] sm:$0xff]  ;;  %v133_v18 = vld [vmem:[%s426_s4 + $0x30] sm:$0xff] }
   0x5   :  { %292 = vmatprep.subr.bf16.mxu0 %v310_v0  ;;  %297 = vmatpush3.bf16.msra.mxu1 %v296_v12  ;;  %v302_v17 = vpack.c.bf16 %v132_v15, %v131_v14  ;;  %v134_v19 = vld [vmem:[%s426_s4 + $0x38] sm:$0xff]  ;;  %v240_v21 = vld [vmem:[%s428_s2] ss:$0 sm:$0xff] }
   0x6   :  { %298 = vmatprep.subr.bf16.mxu1 %v310_v0  ;;  %v305_v20 = vpack.c.bf16 %v134_v19, %v133_v18  ;;  %v242_v28 = vld [vmem:[%s430_s5] ss:$0 sm:$0xff] }
   0x7   :  { %v244_v34 = vld [vmem:[%s432_s7] ss:$0 sm:$0xff] }
   0x8   :  { %294 = vmatpush3.bf16.msra.mxu0 %v293_v11 }
   0x9   :  { %300 = vmatpush3.bf16.msra.mxu1 %v299_v13 }
   0xa   :  { %301 = vmatprep.subr.bf16.mxu1 %v310_v0 }
   0xb   :  { %268 = vmatmul.mubr.msk.f32.vlgmr.msra.gmra.mrb[0].mxu0 %vm48_vm1, %v35_v16 }
   0xd   :  { %303 = vmatpush3.bf16.msra.mxu1 %v302_v17 }
   0xe   :  { %304 = vmatprep.subr.bf16.mxu1 %v310_v0 }
  0x11   :  { %306 = vmatpush3.bf16.msra.mxu1 %v305_v20 }
  0xde   :  { %v118_v22 = vpop.f32.mrb[0].mxu0 }
  0xdf   :  { %v119_v24 = vadd.f32 %v240_v21, %v118_v22  ;;  %v269_v25 = vpop.f32.mrb[1].mxu0 }
  0xe1   :  { %vm122_vm2 = vcmp.ge.f32.partialorder %v119_v24, 0.0  ;;  %v124_v26 = vmul.f32 %v123_v23, %v119_v24 }
  0xe3   :  { %v125_v27 = vsel %vm122_vm2, %v119_v24, %v124_v26 }
  0xe4   :  { %287 = vmatmul.mubr.msk.f32.vlgmr.msra.gmra.mrb[0].mxu1 %vm142_vm3, %v125_v27 }
 0x1b7   :  { %v212_v29 = vpop.f32.mrb[0].mxu1 }
 0x1b8   :  { %v213_v31 = vadd.f32 %v242_v28, %v212_v29  ;;  %v288_v32 = vpop.f32.mrb[1].mxu1 }
 0x1ba   :  { %v218_v33 = vmul.f32 %v217_v30, %v213_v31  ;;  %vm216_vm4 = vcmp.ge.f32.partialorder %v213_v31, 0.0 }
 0x1bc   :  { %v219_v35 = vsel %vm216_vm4, %v213_v31, %v218_v33 }
 0x1bd   :  { %v227_v36 = vmul.f32 %v244_v34, %v219_v35 }
 0x1bf   :  { %v228_v37 = vsel %vm48_vm1, %v227_v36, 0.0 }
 0x1c0   :  { %229 = vadd.xlane.f32.xlu0 %v228_v37 }
 0x24d   :  { %v230_v39 = vpop.xlane.xlu0 %229 }
 0x24e   :  { %v233_v40 = vadd.f32 %v232_v38, %v230_v39 }
 0x250   :  { %235 = vst.msk [vmem:[%s434_s9] sm:$0xff] %vm234_vm5, %v233_v40 }

</bundles_post_ra>
